<compile_context>
chip_gen: v7x
topology: tpu7x:2x2x1
jax: 0.10.0
libtpu: 0.0.40
codegen_flags: <defaults>
</compile_context>

<pallas_src>
import jax
import jax.numpy as jnp
from jax.experimental import pallas as pl
from jax.experimental.pallas import tpu as pltpu


def _vanilla_warp_kernel(x_ref, m_ref, w1_ref, b1_ref, w2_ref, b2_ref,
                         out_ref, score_ref):
    # x_ref: (BT, D, T)  m_ref: (BT, T)  w1: (H, D)  b1: (H, 1)  w2: (H, 1)  b2: (1,) SMEM
    BT, _, T = x_ref.shape

    w1 = w1_ref[...]            # (H, D)
    b1 = b1_ref[...]            # (H, 1)
    w2 = w2_ref[...]            # (H, 1) column form of the 1xH projection
    b2 = b2_ref[0]              # scalar from SMEM

    # ---- backend: Conv1d(D,H,1) -> tanh -> Conv1d(H,1,1), per batch row (static unroll) ----
    for b in range(BT):
        xb = x_ref[b]                                                       # (D, T)
        h = jnp.tanh(
            jnp.dot(w1, xb, preferred_element_type=jnp.float32) + b1)       # (H, T)
        # 1xH projection on VPU (mul) + sublane reduce, not an M=1 MXU matmul
        s = jnp.sum(w2 * h, axis=0, keepdims=True) + b2                     # (1, T)
        score_ref[pl.ds(b, 1), :] = s

    score = score_ref[...]                                                  # (BT, T)

    # ---- NormalizedIntegral (sigmoid non-negativity) ----
    gamma = jax.nn.sigmoid(score)
    m = m_ref[...]                     # mask, first time step already zeroed in wrapper
    dgamma = m * gamma

    # inclusive prefix sum over T (lane axis): Hillis-Steele scan, ceil(log2(T)) steps
    lane = jax.lax.broadcasted_iota(jnp.int32, dgamma.shape, 1)
    g = dgamma
    shift = 1
    while shift < T:
        rolled = pltpu.roll(g, shift, 1)            # rolled[t] = g[t - shift] (wrap masked below)
        g = g + jnp.where(lane >= shift, rolled, 0.0)
        shift *= 2

    g = g * m
    gmax = jnp.max(g, axis=1, keepdims=True)                                # (BT, 1)
    gmax = jnp.where(gmax == 0.0, 1.0, gmax)
    out_ref[...] = g / gmax


def vanilla_warp(x, mask, w1, b1, w2, b2, *, batch_tile=8):
    """x: (B, D, T) channels-first, mask: (B, 1, T). Returns gamma: (B, T)."""
    x = x.astype(jnp.float32)
    B, D, T = x.shape
    H = w1.shape[0]

    # module semantics: mask.squeeze(1), then zero the first time step (mask_mask).
    m2 = mask[:, 0, :].astype(jnp.float32)
    m2 = m2 * (jnp.arange(T) > 0).astype(jnp.float32)[None, :]

    # pad batch so each grid step processes a sublane-dense (BT, T) tile
    BT = batch_tile
    Bp = ((B + BT - 1) // BT) * BT
    if Bp != B:
        x = jnp.pad(x, ((0, Bp - B), (0, 0), (0, 0)))
        m2 = jnp.pad(m2, ((0, Bp - B), (0, 0)))

    w1 = w1.astype(jnp.float32)                      # (H, D)
    b1 = b1.astype(jnp.float32)                      # (H, 1)
    w2c = w2.astype(jnp.float32).reshape(H, 1)       # column form for VPU broadcast
    b2v = b2.astype(jnp.float32).reshape(1)          # scalar -> SMEM

    out = pl.pallas_call(
        _vanilla_warp_kernel,
        out_shape=jax.ShapeDtypeStruct((Bp, T), jnp.float32),
        grid_spec=pltpu.PrefetchScalarGridSpec(
            num_scalar_prefetch=0,
            grid=(Bp // BT,),
            in_specs=[
                pl.BlockSpec((BT, D, T), lambda i: (i, 0, 0)),      # x tile
                pl.BlockSpec((BT, T), lambda i: (i, 0)),            # mask tile
                pl.BlockSpec((H, D), lambda i: (0, 0)),             # W1 (resident)
                pl.BlockSpec((H, 1), lambda i: (0, 0)),             # b1
                pl.BlockSpec((H, 1), lambda i: (0, 0)),             # w2 (column)
                pl.BlockSpec(memory_space=pltpu.MemorySpace.SMEM),  # b2 scalar
            ],
            out_specs=pl.BlockSpec((BT, T), lambda i: (i, 0)),
            scratch_shapes=[pltpu.VMEM((BT, T), jnp.float32)],
        ),
        compiler_params=pltpu.CompilerParams(
            dimension_semantics=("parallel",),   # v7x: shard batch tiles across both TCs
            vmem_limit_bytes=32 * 1024 * 1024,
        ),
    )(x, m2, w1, b1, w2c, b2v)
    return out[:B]                                                  # (B, T)


def vanilla_warp_reference(x, mask, w1, b1, w2, b2):
    # pure-JAX mirror of the PyTorch module semantics
    h = jnp.tanh(jnp.einsum("hd,bdt->bht", w1, x) + b1[None])       # (B, H, T)
    score = jnp.einsum("oh,bht->bot", w2, h)[:, 0, :] + b2[0, 0]    # (B, T)
    gamma = jax.nn.sigmoid(score)
    m = mask[:, 0, :]
    mask_mask = jnp.ones_like(gamma).at[:, 0].set(0.0)
    m = m * mask_mask
    dgamma = m * gamma
    g = jnp.cumsum(dgamma, axis=-1) * m
    gmax = jnp.max(g, axis=1, keepdims=True)
    gmax = jnp.where(gmax == 0.0, 1.0, gmax)
    return g / gmax


if __name__ == "__main__":
    B, D, T, H = 2, 8, 16, 32

    key = jax.random.PRNGKey(0)
    kx, k1, k2, k3, k4 = jax.random.split(key, 5)

    x = jax.random.normal(kx, (B, D, T), dtype=jnp.float32)

    # padding-style mask: sample lengths [16, 12]
    lengths = jnp.array([16, 12], dtype=jnp.int32)
    t_ids = jnp.arange(T)[None, :]
    mask = (t_ids < lengths[:, None]).astype(jnp.float32)[:, None, :]    # (B, 1, T)

    # deterministic synthetic backend parameters
    w1 = 0.2 * jax.random.normal(k1, (H, D), dtype=jnp.float32)
    b1 = 0.1 * jax.random.normal(k2, (H, 1), dtype=jnp.float32)
    w2 = 0.2 * jax.random.normal(k3, (1, H), dtype=jnp.float32)
    b2 = 0.1 * jax.random.normal(k4, (1, 1), dtype=jnp.float32)

    gamma = vanilla_warp(x, mask, w1, b1, w2, b2)
    jax.block_until_ready(gamma)

    gamma_ref = vanilla_warp_reference(x, mask, w1, b1, w2, b2)
    assert gamma.shape == (B, T)
    assert jnp.allclose(gamma, gamma_ref, rtol=1e-5, atol=1e-5)

    print("KERNEL_OK")
</pallas_src>

<mosaic_0001>
module attributes {stable_mosaic.version = 11 : i64} {
  func.func @_vanilla_warp_kernel(%arg0: i32, %arg1: memref<8x8x16xf32, #tpu.memory_space<vmem>>, %arg2: memref<8x16xf32, #tpu.memory_space<vmem>>, %arg3: memref<32x8xf32, #tpu.memory_space<vmem>>, %arg4: memref<32x1xf32, #tpu.memory_space<vmem>>, %arg5: memref<32x1xf32, #tpu.memory_space<vmem>>, %arg6: memref<1xf32, #tpu.memory_space<smem>>, %arg7: memref<8x16xf32, #tpu.memory_space<vmem>>, %arg8: memref<8x16xf32, #tpu.memory_space<vmem>>) attributes {dimension_semantics = [#tpu.dimension_semantics<parallel>], iteration_bounds = array<i64: 1>, scalar_prefetch = 0 : i64, scratch_operands = 1 : i64, tpu.core_type = #tpu.core_type<tc>, window_params = [{transform_indices = @transform_0, window_bounds = array<i64: 8, 8, 16>}, {transform_indices = @transform_1, window_bounds = array<i64: 8, 16>}, {pipeline_mode = #tpu.pipeline_mode<synchronous>, transform_indices = @transform_2, window_bounds = array<i64: 32, 8>}, {pipeline_mode = #tpu.pipeline_mode<synchronous>, transform_indices = @transform_3, window_bounds = array<i64: 32, 1>}, {pipeline_mode = #tpu.pipeline_mode<synchronous>, transform_indices = @transform_4, window_bounds = array<i64: 32, 1>}, {transform_indices = @transform_5, window_bounds = array<i64: 1>}, {transform_indices = @transform_6, window_bounds = array<i64: 8, 16>}]} {
    %c0 = arith.constant 0 : index
    %c0_0 = arith.constant 0 : index
    %0 = vector.load %arg3[%c0, %c0_0] : memref<32x8xf32, #tpu.memory_space<vmem>>, vector<32x8xf32>
    %c0_1 = arith.constant 0 : index
    %c0_2 = arith.constant 0 : index
    %1 = vector.load %arg4[%c0_1, %c0_2] : memref<32x1xf32, #tpu.memory_space<vmem>>, vector<32x1xf32>
    %c0_3 = arith.constant 0 : index
    %c0_4 = arith.constant 0 : index
    %2 = vector.load %arg5[%c0_3, %c0_4] : memref<32x1xf32, #tpu.memory_space<vmem>>, vector<32x1xf32>
    %c0_5 = arith.constant 0 : index
    %3 = memref.load %arg6[%c0_5] : memref<1xf32, #tpu.memory_space<smem>>
    %c0_6 = arith.constant 0 : index
    %c0_7 = arith.constant 0 : index
    %c0_8 = arith.constant 0 : index
    %4 = vector.load %arg1[%c0_6, %c0_7, %c0_8] : memref<8x8x16xf32, #tpu.memory_space<vmem>>, vector<1x8x16xf32>
    %5 = vector.shape_cast %4 : vector<1x8x16xf32> to vector<8x16xf32>
    %cst = arith.constant dense<0.000000e+00> : vector<32x16xf32>
    %6 = tpu.matmul %0, %5, %cst {dimension_numbers = #tpu.dot_dimension_numbers<[1], [0], [0], [1], [0, 0, 1, 1], [], []>} : vector<32x8xf32>, vector<8x16xf32>, vector<32x16xf32> -> vector<32x16xf32>
    %7 = vector.broadcast %1 : vector<32x1xf32> to vector<32x16xf32>
    %8 = arith.addf %6, %7 : vector<32x16xf32>
    %9 = math.tanh %8 : vector<32x16xf32>
    %10 = vector.broadcast %2 : vector<32x1xf32> to vector<32x16xf32>
    %11 = arith.mulf %10, %9 : vector<32x16xf32>
    %cst_9 = arith.constant dense<0.000000e+00> : vector<16xf32>
    %12 = vector.multi_reduction <add>, %11, %cst_9 [0] : vector<32x16xf32> to vector<16xf32>
    %13 = vector.shape_cast %12 : vector<16xf32> to vector<1x16xf32>
    %14 = vector.broadcast %3 : f32 to vector<1x16xf32>
    %15 = arith.addf %13, %14 : vector<1x16xf32>
    %c0_10 = arith.constant 0 : index
    %c0_11 = arith.constant 0 : index
    %16 = vector.load %arg8[%c0_10, %c0_11] : memref<8x16xf32, #tpu.memory_space<vmem>>, vector<1x16xf32>
    tpu.vector_store %arg8[%c0_10, %c0_11], %15 {strides = array<i32>} : memref<8x16xf32, #tpu.memory_space<vmem>>, vector<1x16xf32>,
    %c1 = arith.constant 1 : index
    %c0_12 = arith.constant 0 : index
    %c0_13 = arith.constant 0 : index
    %17 = vector.load %arg1[%c1, %c0_12, %c0_13] : memref<8x8x16xf32, #tpu.memory_space<vmem>>, vector<1x8x16xf32>
    %18 = vector.shape_cast %17 : vector<1x8x16xf32> to vector<8x16xf32>
    %cst_14 = arith.constant dense<0.000000e+00> : vector<32x16xf32>
    %19 = tpu.matmul %0, %18, %cst_14 {dimension_numbers = #tpu.dot_dimension_numbers<[1], [0], [0], [1], [0, 0, 1, 1], [], []>} : vector<32x8xf32>, vector<8x16xf32>, vector<32x16xf32> -> vector<32x16xf32>
    %20 = vector.broadcast %1 : vector<32x1xf32> to vector<32x16xf32>
    %21 = arith.addf %19, %20 : vector<32x16xf32>
    %22 = math.tanh %21 : vector<32x16xf32>
    %23 = vector.broadcast %2 : vector<32x1xf32> to vector<32x16xf32>
    %24 = arith.mulf %23, %22 : vector<32x16xf32>
    %cst_15 = arith.constant dense<0.000000e+00> : vector<16xf32>
    %25 = vector.multi_reduction <add>, %24, %cst_15 [0] : vector<32x16xf32> to vector<16xf32>
    %26 = vector.shape_cast %25 : vector<16xf32> to vector<1x16xf32>
    %27 = vector.broadcast %3 : f32 to vector<1x16xf32>
    %28 = arith.addf %26, %27 : vector<1x16xf32>
    %c1_16 = arith.constant 1 : index
    %c0_17 = arith.constant 0 : index
    %29 = vector.load %arg8[%c1_16, %c0_17] : memref<8x16xf32, #tpu.memory_space<vmem>>, vector<1x16xf32>
    tpu.vector_store %arg8[%c1_16, %c0_17], %28 {strides = array<i32>} : memref<8x16xf32, #tpu.memory_space<vmem>>, vector<1x16xf32>,
    %c2 = arith.constant 2 : index
    %c0_18 = arith.constant 0 : index
    %c0_19 = arith.constant 0 : index
    %30 = vector.load %arg1[%c2, %c0_18, %c0_19] : memref<8x8x16xf32, #tpu.memory_space<vmem>>, vector<1x8x16xf32>
    %31 = vector.shape_cast %30 : vector<1x8x16xf32> to vector<8x16xf32>
    %cst_20 = arith.constant dense<0.000000e+00> : vector<32x16xf32>
    %32 = tpu.matmul %0, %31, %cst_20 {dimension_numbers = #tpu.dot_dimension_numbers<[1], [0], [0], [1], [0, 0, 1, 1], [], []>} : vector<32x8xf32>, vector<8x16xf32>, vector<32x16xf32> -> vector<32x16xf32>
    %33 = vector.broadcast %1 : vector<32x1xf32> to vector<32x16xf32>
    %34 = arith.addf %32, %33 : vector<32x16xf32>
    %35 = math.tanh %34 : vector<32x16xf32>
    %36 = vector.broadcast %2 : vector<32x1xf32> to vector<32x16xf32>
    %37 = arith.mulf %36, %35 : vector<32x16xf32>
    %cst_21 = arith.constant dense<0.000000e+00> : vector<16xf32>
    %38 = vector.multi_reduction <add>, %37, %cst_21 [0] : vector<32x16xf32> to vector<16xf32>
    %39 = vector.shape_cast %38 : vector<16xf32> to vector<1x16xf32>
    %40 = vector.broadcast %3 : f32 to vector<1x16xf32>
    %41 = arith.addf %39, %40 : vector<1x16xf32>
    %c2_22 = arith.constant 2 : index
    %c0_23 = arith.constant 0 : index
    %42 = vector.load %arg8[%c2_22, %c0_23] : memref<8x16xf32, #tpu.memory_space<vmem>>, vector<1x16xf32>
    tpu.vector_store %arg8[%c2_22, %c0_23], %41 {strides = array<i32>} : memref<8x16xf32, #tpu.memory_space<vmem>>, vector<1x16xf32>,
    %c3 = arith.constant 3 : index
    %c0_24 = arith.constant 0 : index
    %c0_25 = arith.constant 0 : index
    %43 = vector.load %arg1[%c3, %c0_24, %c0_25] : memref<8x8x16xf32, #tpu.memory_space<vmem>>, vector<1x8x16xf32>
    %44 = vector.shape_cast %43 : vector<1x8x16xf32> to vector<8x16xf32>
    %cst_26 = arith.constant dense<0.000000e+00> : vector<32x16xf32>
    %45 = tpu.matmul %0, %44, %cst_26 {dimension_numbers = #tpu.dot_dimension_numbers<[1], [0], [0], [1], [0, 0, 1, 1], [], []>} : vector<32x8xf32>, vector<8x16xf32>, vector<32x16xf32> -> vector<32x16xf32>
    %46 = vector.broadcast %1 : vector<32x1xf32> to vector<32x16xf32>
    %47 = arith.addf %45, %46 : vector<32x16xf32>
    %48 = math.tanh %47 : vector<32x16xf32>
    %49 = vector.broadcast %2 : vector<32x1xf32> to vector<32x16xf32>
    %50 = arith.mulf %49, %48 : vector<32x16xf32>
    %cst_27 = arith.constant dense<0.000000e+00> : vector<16xf32>
    %51 = vector.multi_reduction <add>, %50, %cst_27 [0] : vector<32x16xf32> to vector<16xf32>
    %52 = vector.shape_cast %51 : vector<16xf32> to vector<1x16xf32>
    %53 = vector.broadcast %3 : f32 to vector<1x16xf32>
    %54 = arith.addf %52, %53 : vector<1x16xf32>
    %c3_28 = arith.constant 3 : index
    %c0_29 = arith.constant 0 : index
    %55 = vector.load %arg8[%c3_28, %c0_29] : memref<8x16xf32, #tpu.memory_space<vmem>>, vector<1x16xf32>
    tpu.vector_store %arg8[%c3_28, %c0_29], %54 {strides = array<i32>} : memref<8x16xf32, #tpu.memory_space<vmem>>, vector<1x16xf32>,
    %c4 = arith.constant 4 : index
    %c0_30 = arith.constant 0 : index
    %c0_31 = arith.constant 0 : index
    %56 = vector.load %arg1[%c4, %c0_30, %c0_31] : memref<8x8x16xf32, #tpu.memory_space<vmem>>, vector<1x8x16xf32>
    %57 = vector.shape_cast %56 : vector<1x8x16xf32> to vector<8x16xf32>
    %cst_32 = arith.constant dense<0.000000e+00> : vector<32x16xf32>
    %58 = tpu.matmul %0, %57, %cst_32 {dimension_numbers = #tpu.dot_dimension_numbers<[1], [0], [0], [1], [0, 0, 1, 1], [], []>} : vector<32x8xf32>, vector<8x16xf32>, vector<32x16xf32> -> vector<32x16xf32>
    %59 = vector.broadcast %1 : vector<32x1xf32> to vector<32x16xf32>
    %60 = arith.addf %58, %59 : vector<32x16xf32>
    %61 = math.tanh %60 : vector<32x16xf32>
    %62 = vector.broadcast %2 : vector<32x1xf32> to vector<32x16xf32>
    %63 = arith.mulf %62, %61 : vector<32x16xf32>
    %cst_33 = arith.constant dense<0.000000e+00> : vector<16xf32>
    %64 = vector.multi_reduction <add>, %63, %cst_33 [0] : vector<32x16xf32> to vector<16xf32>
    %65 = vector.shape_cast %64 : vector<16xf32> to vector<1x16xf32>
    %66 = vector.broadcast %3 : f32 to vector<1x16xf32>
    %67 = arith.addf %65, %66 : vector<1x16xf32>
    %c4_34 = arith.constant 4 : index
    %c0_35 = arith.constant 0 : index
    %68 = vector.load %arg8[%c4_34, %c0_35] : memref<8x16xf32, #tpu.memory_space<vmem>>, vector<1x16xf32>
    tpu.vector_store %arg8[%c4_34, %c0_35], %67 {strides = array<i32>} : memref<8x16xf32, #tpu.memory_space<vmem>>, vector<1x16xf32>,
    %c5 = arith.constant 5 : index
    %c0_36 = arith.constant 0 : index
    %c0_37 = arith.constant 0 : index
    %69 = vector.load %arg1[%c5, %c0_36, %c0_37] : memref<8x8x16xf32, #tpu.memory_space<vmem>>, vector<1x8x16xf32>
    %70 = vector.shape_cast %69 : vector<1x8x16xf32> to vector<8x16xf32>
    %cst_38 = arith.constant dense<0.000000e+00> : vector<32x16xf32>
    %71 = tpu.matmul %0, %70, %cst_38 {dimension_numbers = #tpu.dot_dimension_numbers<[1], [0], [0], [1], [0, 0, 1, 1], [], []>} : vector<32x8xf32>, vector<8x16xf32>, vector<32x16xf32> -> vector<32x16xf32>
    %72 = vector.broadcast %1 : vector<32x1xf32> to vector<32x16xf32>
    %73 = arith.addf %71, %72 : vector<32x16xf32>
    %74 = math.tanh %73 : vector<32x16xf32>
    %75 = vector.broadcast %2 : vector<32x1xf32> to vector<32x16xf32>
    %76 = arith.mulf %75, %74 : vector<32x16xf32>
    %cst_39 = arith.constant dense<0.000000e+00> : vector<16xf32>
    %77 = vector.multi_reduction <add>, %76, %cst_39 [0] : vector<32x16xf32> to vector<16xf32>
    %78 = vector.shape_cast %77 : vector<16xf32> to vector<1x16xf32>
    %79 = vector.broadcast %3 : f32 to vector<1x16xf32>
    %80 = arith.addf %78, %79 : vector<1x16xf32>
    %c5_40 = arith.constant 5 : index
    %c0_41 = arith.constant 0 : index
    %81 = vector.load %arg8[%c5_40, %c0_41] : memref<8x16xf32, #tpu.memory_space<vmem>>, vector<1x16xf32>
    tpu.vector_store %arg8[%c5_40, %c0_41], %80 {strides = array<i32>} : memref<8x16xf32, #tpu.memory_space<vmem>>, vector<1x16xf32>,
    %c6 = arith.constant 6 : index
    %c0_42 = arith.constant 0 : index
    %c0_43 = arith.constant 0 : index
    %82 = vector.load %arg1[%c6, %c0_42, %c0_43] : memref<8x8x16xf32, #tpu.memory_space<vmem>>, vector<1x8x16xf32>
    %83 = vector.shape_cast %82 : vector<1x8x16xf32> to vector<8x16xf32>
    %cst_44 = arith.constant dense<0.000000e+00> : vector<32x16xf32>
    %84 = tpu.matmul %0, %83, %cst_44 {dimension_numbers = #tpu.dot_dimension_numbers<[1], [0], [0], [1], [0, 0, 1, 1], [], []>} : vector<32x8xf32>, vector<8x16xf32>, vector<32x16xf32> -> vector<32x16xf32>
    %85 = vector.broadcast %1 : vector<32x1xf32> to vector<32x16xf32>
    %86 = arith.addf %84, %85 : vector<32x16xf32>
    %87 = math.tanh %86 : vector<32x16xf32>
    %88 = vector.broadcast %2 : vector<32x1xf32> to vector<32x16xf32>
    %89 = arith.mulf %88, %87 : vector<32x16xf32>
    %cst_45 = arith.constant dense<0.000000e+00> : vector<16xf32>
    %90 = vector.multi_reduction <add>, %89, %cst_45 [0] : vector<32x16xf32> to vector<16xf32>
    %91 = vector.shape_cast %90 : vector<16xf32> to vector<1x16xf32>
    %92 = vector.broadcast %3 : f32 to vector<1x16xf32>
    %93 = arith.addf %91, %92 : vector<1x16xf32>
    %c6_46 = arith.constant 6 : index
    %c0_47 = arith.constant 0 : index
    %94 = vector.load %arg8[%c6_46, %c0_47] : memref<8x16xf32, #tpu.memory_space<vmem>>, vector<1x16xf32>
    tpu.vector_store %arg8[%c6_46, %c0_47], %93 {strides = array<i32>} : memref<8x16xf32, #tpu.memory_space<vmem>>, vector<1x16xf32>,
    %c7 = arith.constant 7 : index
    %c0_48 = arith.constant 0 : index
    %c0_49 = arith.constant 0 : index
    %95 = vector.load %arg1[%c7, %c0_48, %c0_49] : memref<8x8x16xf32, #tpu.memory_space<vmem>>, vector<1x8x16xf32>
    %96 = vector.shape_cast %95 : vector<1x8x16xf32> to vector<8x16xf32>
    %cst_50 = arith.constant dense<0.000000e+00> : vector<32x16xf32>
    %97 = tpu.matmul %0, %96, %cst_50 {dimension_numbers = #tpu.dot_dimension_numbers<[1], [0], [0], [1], [0, 0, 1, 1], [], []>} : vector<32x8xf32>, vector<8x16xf32>, vector<32x16xf32> -> vector<32x16xf32>
    %98 = vector.broadcast %1 : vector<32x1xf32> to vector<32x16xf32>
    %99 = arith.addf %97, %98 : vector<32x16xf32>
    %100 = math.tanh %99 : vector<32x16xf32>
    %101 = vector.broadcast %2 : vector<32x1xf32> to vector<32x16xf32>
    %102 = arith.mulf %101, %100 : vector<32x16xf32>
    %cst_51 = arith.constant dense<0.000000e+00> : vector<16xf32>
    %103 = vector.multi_reduction <add>, %102, %cst_51 [0] : vector<32x16xf32> to vector<16xf32>
    %104 = vector.shape_cast %103 : vector<16xf32> to vector<1x16xf32>
    %105 = vector.broadcast %3 : f32 to vector<1x16xf32>
    %106 = arith.addf %104, %105 : vector<1x16xf32>
    %c7_52 = arith.constant 7 : index
    %c0_53 = arith.constant 0 : index
    %107 = vector.load %arg8[%c7_52, %c0_53] : memref<8x16xf32, #tpu.memory_space<vmem>>, vector<1x16xf32>
    tpu.vector_store %arg8[%c7_52, %c0_53], %106 {strides = array<i32>} : memref<8x16xf32, #tpu.memory_space<vmem>>, vector<1x16xf32>,
    %c0_54 = arith.constant 0 : index
    %c0_55 = arith.constant 0 : index
    %108 = vector.load %arg8[%c0_54, %c0_55] : memref<8x16xf32, #tpu.memory_space<vmem>>, vector<8x16xf32>
    %109 = arith.negf %108 : vector<8x16xf32>
    %110 = math.exp %109 : vector<8x16xf32>
    %cst_56 = arith.constant 1.000000e+00 : f32
    %111 = vector.broadcast %cst_56 : f32 to vector<8x16xf32>
    %112 = arith.addf %111, %110 : vector<8x16xf32>
    %113 = arith.divf %111, %112 : vector<8x16xf32>
    %c0_57 = arith.constant 0 : index
    %c0_58 = arith.constant 0 : index
    %114 = vector.load %arg2[%c0_57, %c0_58] : memref<8x16xf32, #tpu.memory_space<vmem>>, vector<8x16xf32>
    %115 = arith.mulf %114, %113 : vector<8x16xf32>
    %116 = tpu.iota {dimensions = array<i32: 1>} : vector<8x16xi32>
    %c1_i32 = arith.constant 1 : i32
    %117 = tpu.dynamic_rotate %115 by %c1_i32 dim 1 : vector<8x16xf32>, i32 -> vector<8x16xf32>
    %c1_i32_59 = arith.constant 1 : i32
    %118 = vector.broadcast %c1_i32_59 : i32 to vector<8x16xi32>
    %119 = arith.cmpi sge, %116, %118 : vector<8x16xi32>
    %cst_60 = arith.constant 0.000000e+00 : f32
    %120 = vector.broadcast %cst_60 : f32 to vector<8x16xf32>
    %121 = arith.select %119, %117, %120 : vector<8x16xi1>, vector<8x16xf32>
    %122 = arith.addf %115, %121 : vector<8x16xf32>
    %c2_i32 = arith.constant 2 : i32
    %123 = tpu.dynamic_rotate %122 by %c2_i32 dim 1 : vector<8x16xf32>, i32 -> vector<8x16xf32>
    %c2_i32_61 = arith.constant 2 : i32
    %124 = vector.broadcast %c2_i32_61 : i32 to vector<8x16xi32>
    %125 = arith.cmpi sge, %116, %124 : vector<8x16xi32>
    %cst_62 = arith.constant 0.000000e+00 : f32
    %126 = vector.broadcast %cst_62 : f32 to vector<8x16xf32>
    %127 = arith.select %125, %123, %126 : vector<8x16xi1>, vector<8x16xf32>
    %128 = arith.addf %122, %127 : vector<8x16xf32>
    %c4_i32 = arith.constant 4 : i32
    %129 = tpu.dynamic_rotate %128 by %c4_i32 dim 1 : vector<8x16xf32>, i32 -> vector<8x16xf32>
    %c4_i32_63 = arith.constant 4 : i32
    %130 = vector.broadcast %c4_i32_63 : i32 to vector<8x16xi32>
    %131 = arith.cmpi sge, %116, %130 : vector<8x16xi32>
    %cst_64 = arith.constant 0.000000e+00 : f32
    %132 = vector.broadcast %cst_64 : f32 to vector<8x16xf32>
    %133 = arith.select %131, %129, %132 : vector<8x16xi1>, vector<8x16xf32>
    %134 = arith.addf %128, %133 : vector<8x16xf32>
    %c8_i32 = arith.constant 8 : i32
    %135 = tpu.dynamic_rotate %134 by %c8_i32 dim 1 : vector<8x16xf32>, i32 -> vector<8x16xf32>
    %c8_i32_65 = arith.constant 8 : i32
    %136 = vector.broadcast %c8_i32_65 : i32 to vector<8x16xi32>
    %137 = arith.cmpi sge, %116, %136 : vector<8x16xi32>
    %cst_66 = arith.constant 0.000000e+00 : f32
    %138 = vector.broadcast %cst_66 : f32 to vector<8x16xf32>
    %139 = arith.select %137, %135, %138 : vector<8x16xi1>, vector<8x16xf32>
    %140 = arith.addf %134, %139 : vector<8x16xf32>
    %141 = arith.mulf %140, %114 : vector<8x16xf32>
    %cst_67 = arith.constant dense<0xFF800000> : vector<8xf32>
    %142 = vector.multi_reduction <maximumf>, %141, %cst_67 [1] : vector<8x16xf32> to vector<8xf32>
    %143 = vector.shape_cast %142 : vector<8xf32> to vector<8x1xf32>
    %cst_68 = arith.constant 0.000000e+00 : f32
    %144 = vector.broadcast %cst_68 : f32 to vector<8x1xf32>
    %145 = arith.cmpf oeq, %143, %144 : vector<8x1xf32>
    %cst_69 = arith.constant 1.000000e+00 : f32
    %146 = vector.broadcast %cst_69 : f32 to vector<8x1xf32>
    %147 = arith.select %145, %146, %143 : vector<8x1xi1>, vector<8x1xf32>
    %148 = vector.broadcast %147 : vector<8x1xf32> to vector<8x16xf32>
    %149 = arith.divf %141, %148 : vector<8x16xf32>
    %c0_70 = arith.constant 0 : index
    %c0_71 = arith.constant 0 : index
    %150 = vector.load %arg7[%c0_70, %c0_71] : memref<8x16xf32, #tpu.memory_space<vmem>>, vector<8x16xf32>
    tpu.vector_store %arg7[%c0_70, %c0_71], %149 {strides = array<i32>} : memref<8x16xf32, #tpu.memory_space<vmem>>, vector<8x16xf32>,
    return
  }
  func.func @transform_0(%arg0: i32) -> (i32, i32, i32) {
    %c0_i32 = arith.constant 0 : i32
    %c0_i32_0 = arith.constant 0 : i32
    %c0_i32_1 = arith.constant 0 : i32
    return %arg0, %c0_i32, %c0_i32_0 : i32, i32, i32
  }
  func.func @transform_1(%arg0: i32) -> (i32, i32) {
    %c0_i32 = arith.constant 0 : i32
    %c0_i32_0 = arith.constant 0 : i32
    return %arg0, %c0_i32 : i32, i32
  }
  func.func @transform_2(%arg0: i32) -> (i32, i32) {
    %c0_i32 = arith.constant 0 : i32
    %c0_i32_0 = arith.constant 0 : i32
    %c0_i32_1 = arith.constant 0 : i32
    return %c0_i32, %c0_i32_0 : i32, i32
  }
  func.func @transform_3(%arg0: i32) -> (i32, i32) {
    %c0_i32 = arith.constant 0 : i32
    %c0_i32_0 = arith.constant 0 : i32
    %c0_i32_1 = arith.constant 0 : i32
    return %c0_i32, %c0_i32_0 : i32, i32
  }
  func.func @transform_4(%arg0: i32) -> (i32, i32) {
    %c0_i32 = arith.constant 0 : i32
    %c0_i32_0 = arith.constant 0 : i32
    %c0_i32_1 = arith.constant 0 : i32
    return %c0_i32, %c0_i32_0 : i32, i32
  }
  func.func @transform_5(%arg0: i32) -> i32 {
    %c0_i32 = arith.constant 0 : i32
    %c0_i32_0 = arith.constant 0 : i32
    return %c0_i32 : i32
  }
  func.func @transform_6(%arg0: i32) -> (i32, i32) {
    %c0_i32 = arith.constant 0 : i32
    %c0_i32_0 = arith.constant 0 : i32
    return %arg0, %c0_i32 : i32, i32
  }
}

</mosaic_0001>

<bundles_post_ra>
// kernel: tpu_custom_call.1
= control target key start
LH: loop header
LB: loop body
LE: loop exit
PB: predicated region body
PF: predicated region fallthrough
CT: control target
= control target key end

     0   :  { %vm59_vm0 = vcmask 64512   ;;  %s1648_s0 = inlined_call_operand.vmem [shape: f32[8,8,16], index: 0, kind: input, shape index: {}]   ;;  %s1649_s1 = inlined_call_operand.vmem [shape: f32[8,16], index: 1, kind: input, shape index: {}]   ;;  %s1650_s2 = inlined_call_operand.vmem [shape: f32[32,8], index: 2, kind: input, shape index: {}]   ;;  %s1651_s3 = inlined_call_operand.vmem [shape: f32[32,1], index: 3, kind: input, shape index: {}]   ;;  %s1652_s4 = inlined_call_operand.vmem [shape: f32[32,1], index: 4, kind: input, shape index: {}]   ;;  %s1653_s5 = inlined_call_operand.<no memory space> [shape: f32[1], index: 5, kind: input, shape index: {}]   ;;  %s1654_s6 = inlined_call_operand.hbm [shape: f32[8,16], index: 6, kind: output, shape index: {}]  }
   0x1   :  { %v38_v0 = vld [vmem:[%s1648_s0] sm:$0xff]  ;;  %v1064_v1 = vld [vmem:[%s1648_s0 + $0x8] sm:$0xff]  ;;  %v1069_v4 = vld [vmem:[%s1648_s0 + $0x10] sm:$0xff] }
   0x2   :  { %v1358_v2 = vld [vmem:[%s1650_s2] sm:$0xff]  ;;  %1140 = vmatprep.subr.mxu0 %v38_v0  ;;  %1148 = vmatprep.subr.mxu1 %v1064_v1  ;;  %v1363_v3 = vld [vmem:[%s1650_s2 + $0x8] sm:$0xff]  ;;  %v1074_v5 = vld [vmem:[%s1648_s0 + $0x18] sm:$0xff] }
   0x3   :  { %1141 = vmatpush3.msra.mxu0 %v38_v0  ;;  %1142 = vmatprep.mubr.msk.f32.mxu0 %vm59_vm0, %v1358_v2  ;;  %v27_v6 = vld [vmem:[%s1650_s2 + $0x10] sm:$0xff]  ;;  %v28_v7 = vld [vmem:[%s1650_s2 + $0x18] sm:$0xff] }
   0x4   :  { %1149 = vmatpush3.msra.mxu1 %v1064_v1  ;;  %1150 = vmatprep.mubr.msk.f32.mxu1 %vm59_vm0, %v1358_v2 }
   0x5   :  { %1143 = vmatmul.mubr.msk.f32.vlgmr.msra.gmra.mrb[0].mxu0 %vm59_vm0, %v1363_v3  ;;  %1151 = vmatmul.mubr.msk.f32.vlgmr.msra.gmra.mrb[0].mxu1 %vm59_vm0, %v1363_v3 }
   0x6   :  { %1156 = vmatprep.subr.mxu0 %v1069_v4  ;;  %1164 = vmatprep.subr.mxu1 %v1074_v5 }
   0x7   :  { %1157 = vmatpush3.msra.mxu0 %v1069_v4  ;;  %1165 = vmatpush3.msra.mxu1 %v1074_v5 }
   0x8   :  { %12 = vsyncpa [#allocation5], 0  ;;  %1145 = vmatprep.mubr.msk.f32.mxu0 %vm59_vm0, %v27_v6  ;;  %1153 = vmatprep.mubr.msk.f32.mxu1 %vm59_vm0, %v27_v6  ;;  %v1079_v8 = vld [vmem:[%s1648_s0 + $0x20] sm:$0xff]  ;;  %v1084_v9 = vld [vmem:[%s1648_s0 + $0x28] sm:$0xff]  ;;  %v1307_v10 = vmov 0   ;;  %vm185_vm1 = vcmask 130048  }
   0x9   :  { %1146 = vmatmul.mubr.msk.f32.gmra.mrb[2].mxu0 %vm59_vm0, %v28_v7  ;;  %1154 = vmatmul.mubr.msk.f32.gmra.mrb[2].mxu1 %vm59_vm0, %v28_v7  ;;  %v1089_v11 = vld [vmem:[%s1648_s0 + $0x30] sm:$0xff]  ;;  %v1094_v12 = vld [vmem:[%s1648_s0 + $0x38] sm:$0xff]  ;;  %v29_v13 = vld [vmem:[%s1651_s3] sm:$0xff]  ;;  %vm201_vm2 = vcmask 122880   ;;  %s1308_s12 = smov 16   ;;  %vm984_vm3 = vcmask 1047680  }
   0xa   :  { %1158 = vmatprep.mubr.msk.f32.mxu0 %vm59_vm0, %v1358_v2  ;;  %1166 = vmatprep.mubr.msk.f32.mxu1 %vm59_vm0, %v1358_v2  ;;  %v31_v14 = vld [vmem:[%s1651_s3 + $0x10] sm:$0xff]  ;;  %v30_v15 = vld [vmem:[%s1651_s3 + $0x8] sm:$0xff]  ;;  %v32_v16 = vld [vmem:[%s1651_s3 + $0x18] sm:$0xff]  ;;  %s1309_s13 = smov 113   ;;  %s1311_s14 = smov 116  }
   0xb   :  { %1172 = vmatprep.subr.mxu0 %v1079_v8  ;;  %1180 = vmatprep.subr.mxu1 %v1084_v9  ;;  %v34_v17 = vld [vmem:[%s1652_s4 + $0x8] sm:$0xff]  ;;  %v33_v18 = vld [vmem:[%s1652_s4] sm:$0xff]  ;;  %v36_v19 = vld [vmem:[%s1652_s4 + $0x18] sm:$0xff]  ;;  %s1312_s15 = smov 120   ;;  %s1313_s16 = smov [#allocation4]  }
   0xc   :  { %1211 = vset.pattern.permute.xlu0 %v1307_v10  ;;  %1212 = vset.pattern.permute.xlu1 %v1307_v10  ;;  %v35_v20 = vld [vmem:[%s1652_s4 + $0x10] sm:$0xff]  ;;  %s1052_s2 = sshll.u32 %s1313_s16, 4  ;;  %s1053_s2 = int_to_ptr.vmem [resolvable:$true] %s1052_s2 }
   0xd   :  { %1159 = vmatmul.mubr.msk.f32.vlgmr.msra.gmra.mrb[4].mxu0 %vm59_vm0, %v1363_v3  ;;  %1167 = vmatmul.mubr.msk.f32.vlgmr.msra.gmra.mrb[4].mxu1 %vm59_vm0, %v1363_v3  ;;  %s1283_s17 = scalar_lea.vmem %s1053_s2, 128  ;;  %p1288_p1 = scmp.lt.s32.totalorder %s1053_s2, %s1053_s2 }
   0xe   :  { %1173 = vmatpush3.msra.mxu0 %v1079_v8  ;;  %1181 = vmatpush3.msra.mxu1 %v1084_v9  ;;  %p1284_p0 = scmp.ne.s32.totalorder %s1053_s2, %s1283_s17  ;;  %p1289_p2 = scmp.lt.s32.totalorder %s1283_s17, %s1283_s17 }
   0xf   :  { %1161 = vmatprep.mubr.msk.f32.mxu0 %vm59_vm0, %v27_v6  ;;  %1169 = vmatprep.mubr.msk.f32.mxu1 %vm59_vm0, %v27_v6 }
  0x10   :  { %1188 = vmatprep.subr.mxu0 %v1089_v11  ;;  %1196 = vmatprep.subr.mxu1 %v1094_v12  ;;  %p1290_p3 = por %p1289_p2, %p1288_p1 }
  0x11   :  { %1162 = vmatmul.mubr.msk.f32.gmra.mrb[6].mxu0 %vm59_vm0, %v28_v7  ;;  %1170 = vmatmul.mubr.msk.f32.gmra.mrb[6].mxu1 %vm59_vm0, %v28_v7 }
  0x12   :  { %1174 = vmatprep.mubr.msk.f32.mxu0 %vm59_vm0, %v1358_v2  ;;  %1182 = vmatprep.mubr.msk.f32.mxu1 %vm59_vm0, %v1358_v2  ;;  %p1291_p4 = pnand %p1290_p3, %p1284_p0 }
  0x13   :  { %41 = vperm.xlu0 %1211, %v29_v13   ;;  %51 = vperm.xlu1 %1212, %v31_v14  }
  0x15   :  { %1175 = vmatmul.mubr.msk.f32.vlgmr.msra.gmra.mrb[8].mxu0 %vm59_vm0, %v1363_v3  ;;  %1183 = vmatmul.mubr.msk.f32.vlgmr.msra.gmra.mrb[8].mxu1 %vm59_vm0, %v1363_v3 }
  0x16   :  { %1189 = vmatpush3.msra.mxu0 %v1089_v11  ;;  %1197 = vmatpush3.msra.mxu1 %v1094_v12 }
  0x17   :  { %1177 = vmatprep.mubr.msk.f32.mxu0 %vm59_vm0, %v27_v6  ;;  %1185 = vmatprep.mubr.msk.f32.mxu1 %vm59_vm0, %v27_v6 }
  0x18   :  { %46 = vperm.xlu0 %1211, %v30_v15   ;;  %56 = vperm.xlu1 %1212, %v32_v16  }
  0x19   :  { %1178 = vmatmul.mubr.msk.f32.gmra.mrb[10].mxu0 %vm59_vm0, %v28_v7  ;;  %1186 = vmatmul.mubr.msk.f32.gmra.mrb[10].mxu1 %vm59_vm0, %v28_v7 }
  0x1a   :  { %1190 = vmatprep.mubr.msk.f32.mxu0 %vm59_vm0, %v1358_v2  ;;  %1198 = vmatprep.mubr.msk.f32.mxu1 %vm59_vm0, %v1358_v2 }
  0x1c   :  { %168 = vperm.xlu1 %1212, %v34_v17   ;;  %163 = vperm.xlu0 %1211, %v33_v18  }
  0x1d   :  { %1191 = vmatmul.mubr.msk.f32.vlgmr.msra.gmra.mrb[12].mxu0 %vm59_vm0, %v1363_v3  ;;  %1199 = vmatmul.mubr.msk.f32.vlgmr.msra.gmra.mrb[12].mxu1 %vm59_vm0, %v1363_v3 }
  0x1e   :  { %1193 = vmatprep.mubr.msk.f32.mxu0 %vm59_vm0, %v27_v6  ;;  %1201 = vmatprep.mubr.msk.f32.mxu1 %vm59_vm0, %v27_v6 }
  0x20   :  { %178 = vperm.xlu1 %1212, %v36_v19   ;;  %173 = vperm.xlu0 %1211, %v35_v20  }
  0x21   :  { %1194 = vmatmul.mubr.msk.f32.gmra.mrb[14].mxu0 %vm59_vm0, %v28_v7  ;;  %1202 = vmatmul.mubr.msk.f32.gmra.mrb[14].mxu1 %vm59_vm0, %v28_v7 }
  0x92   :  { %v1461_v21 = vpop.permute.xlu0 %41  ;;  %v1463_v22 = vpop.permute.xlu1 %51 }
  0x97   :  { %v1465_v23 = vpop.permute.xlu0 %46  ;;  %v1471_v32 = vpop.permute.xlu1 %56 }
  0x9b   :  { %v1477_v41 = vpop.permute.xlu1 %168  ;;  %v1483_v50 = vpop.permute.xlu0 %163 }
  0x9f   :  { %v1491_v0 = vpop.permute.xlu1 %178  ;;  %v1501_v16 = vpop.permute.xlu0 %173 }
  0xd8   :  { %v1144_v24 = vpop.f32.mrb[0].mxu0  ;;  %v1152_v25 = vpop.f32.mrb[0].mxu1 }
  0xd9   :  { %v144_v26 = vadd.f32 %v1144_v24, %v1465_v23  ;;  %v277_v27 = vadd.f32 %v1152_v25, %v1465_v23  ;;  %v138_v28 = vpop.f32.mrb[1].mxu0  ;;  %v271_v29 = vpop.f32.mrb[1].mxu1 }
  0xda   :  { %v139_v30 = vadd.f32 %v138_v28, %v1461_v21  ;;  %v272_v31 = vadd.f32 %v271_v29, %v1461_v21 }
  0xdb   :  { %1213 = vtanh.f32 %v144_v26 }
  0xdc   :  { %1215 = vtanh.f32 %v277_v27  ;;  %v1147_v33 = vpop.f32.mrb[2].mxu0  ;;  %v1155_v34 = vpop.f32.mrb[2].mxu1 }
  0xdd   :  { %1217 = vtanh.f32 %v139_v30  ;;  %v154_v35 = vadd.f32 %v1147_v33, %v1471_v32  ;;  %v287_v36 = vadd.f32 %v1155_v34, %v1471_v32  ;;  %v148_v37 = vpop.f32.mrb[3].mxu0  ;;  %v281_v38 = vpop.f32.mrb[3].mxu1 }
  0xde   :  { %1219 = vtanh.f32 %v272_v31  ;;  %v149_v39 = vadd.f32 %v148_v37, %v1463_v22  ;;  %v282_v40 = vadd.f32 %v281_v38, %v1463_v22 }
  0xdf   :  { %1221 = vtanh.f32 %v154_v35 }
  0xe0   :  { %1223 = vtanh.f32 %v287_v36  ;;  %v1160_v42 = vpop.f32.mrb[4].mxu0  ;;  %v1168_v43 = vpop.f32.mrb[4].mxu1 }
  0xe1   :  { %1225 = vtanh.f32 %v149_v39  ;;  %v387_v44 = vadd.f32 %v1160_v42, %v1465_v23  ;;  %v497_v45 = vadd.f32 %v1168_v43, %v1465_v23  ;;  %v381_v46 = vpop.f32.mrb[5].mxu0  ;;  %v491_v47 = vpop.f32.mrb[5].mxu1 }
  0xe2   :  { %1227 = vtanh.f32 %v282_v40  ;;  %v382_v48 = vadd.f32 %v381_v46, %v1461_v21  ;;  %v492_v49 = vadd.f32 %v491_v47, %v1461_v21 }
  0xe3   :  { %1229 = vtanh.f32 %v387_v44 }
  0xe4   :  { %1231 = vtanh.f32 %v497_v45  ;;  %v1163_v51 = vpop.f32.mrb[6].mxu0  ;;  %v1171_v52 = vpop.f32.mrb[6].mxu1 }
  0xe5   :  { %v1214_v53 = vpop.eup %1213  ;;  %1233 = vtanh.f32 %v382_v48  ;;  %v397_v54 = vadd.f32 %v1163_v51, %v1471_v32  ;;  %v507_v55 = vadd.f32 %v1171_v52, %v1471_v32  ;;  %v391_v56 = vpop.f32.mrb[7].mxu0 }
  0xe6   :  { %v501_v57 = vpop.f32.mrb[7].mxu1  ;;  %v1216_v58 = vpop.eup %1215  ;;  %1235 = vtanh.f32 %v492_v49  ;;  %v392_v59 = vadd.f32 %v391_v56, %v1463_v22  ;;  %v182_v61 = vmul.f32 %v1214_v53, %v1477_v41 }
  0xe7   :  { %v502_v60 = vadd.f32 %v501_v57, %v1463_v22  ;;  %v1218_v62 = vpop.eup %1217  ;;  %1237 = vtanh.f32 %v397_v54  ;;  %v295_v63 = vmul.f32 %v1216_v58, %v1477_v41 }
  0xe8   :  { %v1220_v1 = vpop.eup %1219  ;;  %1239 = vtanh.f32 %v507_v55  ;;  %v187_v2 = vsel %vm185_vm1, %v182_v61, 0.0  ;;  %v181_v3 = vmul.f32 %v1218_v62, %v1483_v50  ;;  %v1176_v4 = vpop.f32.mrb[8].mxu0 }
  0xe9   :  { %v1184_v5 = vpop.f32.mrb[8].mxu1  ;;  %v1222_v6 = vpop.eup %1221  ;;  %1241 = vtanh.f32 %v392_v59  ;;  %v299_v7 = vsel %vm185_vm1, %v295_v63, 0.0  ;;  %v294_v8 = vmul.f32 %v1220_v1, %v1483_v50  ;;  %v607_v9 = vadd.f32 %v1176_v4, %v1465_v23 }
  0xea   :  { %v601_v10 = vpop.f32.mrb[9].mxu0  ;;  %v711_v11 = vpop.f32.mrb[9].mxu1  ;;  %1243 = vtanh.f32 %v502_v60  ;;  %v186_v13 = vsel %vm185_vm1, %v181_v3, 0.0  ;;  %v717_v14 = vadd.f32 %v1184_v5, %v1465_v23  ;;  %v184_v26 = vmul.f32 %v1222_v6, %v1491_v0 }
  0xeb   :  { %v1224_v12 = vpop.eup %1223  ;;  %v602_v15 = vadd.f32 %v601_v10, %v1461_v21  ;;  %v188_v18 = vadd.f32 %v187_v2, %v186_v13  ;;  %v298_v19 = vsel %vm185_vm1, %v294_v8, 0.0  ;;  %1245 = vtanh.f32 %v607_v9 }
  0xec   :  { %v1226_v17 = vpop.eup %1225  ;;  %v712_v20 = vadd.f32 %v711_v11, %v1461_v21  ;;  %v300_v25 = vadd.f32 %v299_v7, %v298_v19  ;;  %1247 = vtanh.f32 %v717_v14  ;;  %v297_v27 = vmul.f32 %v1224_v12, %v1491_v0  ;;  %v1179_v28 = vpop.f32.mrb[10].mxu0 }
  0xed   :  { %v1228_v24 = vpop.eup %1227  ;;  %v1187_v29 = vpop.f32.mrb[10].mxu1  ;;  %1249 = vtanh.f32 %v602_v15  ;;  %v183_v31 = vmul.f32 %v1226_v17, %v1501_v16  ;;  %v191_v38 = vsel %vm185_vm1, %v184_v26, 0.0  ;;  %v617_v39 = vadd.f32 %v1179_v28, %v1471_v32 }
  0xee   :  { %v1230_v30 = vpop.eup %1229  ;;  %v296_v33 = vmul.f32 %v1228_v24, %v1501_v16  ;;  %v611_v34 = vpop.f32.mrb[11].mxu0  ;;  %1251 = vtanh.f32 %v712_v20  ;;  %v303_v43 = vsel %vm185_vm1, %v297_v27, 0.0  ;;  %v727_v57 = vadd.f32 %v1187_v29, %v1471_v32 }
  0xef   :  { %v721_v35 = vpop.f32.mrb[11].mxu1  ;;  %v1232_v36 = vpop.eup %1231  ;;  %v405_v37 = vmul.f32 %v1230_v30, %v1477_v41  ;;  %v189_v44 = vsel %vm185_vm1, %v183_v31, 0.0  ;;  %v612_v58 = vadd.f32 %v611_v34, %v1463_v22  ;;  %1253 = vtanh.f32 %v617_v39 }
  0xf0   :  { %v1234_v40 = vpop.eup %1233  ;;  %v515_v42 = vmul.f32 %v1232_v36, %v1477_v41  ;;  %v301_v45 = vsel %vm185_vm1, %v296_v33, 0.0  ;;  %v190_v49 = vadd.f32 %v189_v44, %v188_v18  ;;  %v1192_v52 = vpop.f32.mrb[12].mxu0  ;;  %1255 = vtanh.f32 %v727_v57 }
  0xf1   :  { %v1236_v46 = vpop.eup %1235  ;;  %v409_v47 = vsel %vm185_vm1, %v405_v37, 0.0  ;;  %v404_v48 = vmul.f32 %v1234_v40, %v1483_v50  ;;  %v302_v51 = vadd.f32 %v301_v45, %v300_v25  ;;  %v1518_v53 = vpop.f32.mrb[12].mxu1  ;;  %1257 = vtanh.f32 %v612_v58 }
  0xf2   :  { %v1238_v54 = vpop.eup %1237  ;;  %v519_v55 = vsel %vm185_vm1, %v515_v42, 0.0  ;;  %v514_v56 = vmul.f32 %v1236_v46, %v1483_v50  ;;  %v1524_v59 = vpop.f32.mrb[13].mxu0  ;;  %v192_v1 = vadd.f32 %v191_v38, %v190_v49  ;;  %v722_v33 = vadd.f32 %v721_v35, %v1463_v22 }
  0xf3   :  { %v1526_v60 = vpop.f32.mrb[13].mxu1  ;;  %v1240_v61 = vpop.eup %1239  ;;  %v408_v62 = vsel %vm185_vm1, %v404_v48, 0.0  ;;  %v407_v63 = vmul.f32 %v1238_v54, %v1491_v0  ;;  %v304_v2 = vadd.f32 %v303_v43, %v302_v51  ;;  %v827_v48 = vadd.f32 %v1192_v52, %v1465_v23 }
  0xf4   :  { %v1242_v3 = vpop.eup %1241  ;;  %v410_v4 = vadd.f32 %v409_v47, %v408_v62  ;;  %v518_v5 = vsel %vm185_vm1, %v514_v56, 0.0  ;;  %v517_v6 = vmul.f32 %v1240_v61, %v1491_v0  ;;  %v193_v9 = vrot.slane %v192_v1, 4  ;;  %v1532_v11 = vpop.f32.mrb[14].mxu0 }
  0xf5   :  { %v1244_v7 = vpop.eup %1243  ;;  %v520_v8 = vadd.f32 %v519_v55, %v518_v5  ;;  %v305_v10 = vrot.slane %v304_v2, 4  ;;  %v1534_v12 = vpop.f32.mrb[14].mxu1  ;;  %v413_v14 = vsel %vm185_vm1, %v407_v63, 0.0  ;;  %v406_v15 = vmul.f32 %v1242_v3, %v1501_v16 }
  0xf6   :  { %v1246_v13 = vpop.eup %1245  ;;  %v516_v17 = vmul.f32 %v1244_v7, %v1501_v16  ;;  %v831_v18 = vpop.f32.mrb[15].mxu0  ;;  %v523_v25 = vsel %vm185_vm1, %v517_v6, 0.0  ;;  %v194_v26 = vadd.f32 %v193_v9, %v192_v1  ;;  %v1559_v56 = vstv %s1653_s5 }
  0xf7   :  { %v1539_v19 = vpop.f32.mrb[15].mxu1  ;;  %v1248_v20 = vpop.eup %1247  ;;  %v625_v24 = vmul.f32 %v1246_v13, %v1477_v41  ;;  %v306_v27 = vadd.f32 %v305_v10, %v304_v2  ;;  %v411_v30 = vsel %vm185_vm1, %v406_v15, 0.0  ;;  %1259 = vtanh.f32 %v722_v33 }
  0xf8   :  { %v1250_v28 = vpop.eup %1249  ;;  %v735_v29 = vmul.f32 %v1248_v20, %v1477_v41  ;;  %v521_v31 = vsel %vm185_vm1, %v516_v17, 0.0  ;;  %v195_v38 = vrot.slane %v194_v26, 2  ;;  %v412_v43 = vadd.f32 %v411_v30, %v410_v4 }
  0xf9   :  { %v1252_v34 = vpop.eup %1251  ;;  %v629_v36 = vsel %vm185_vm1, %v625_v24, 0.0  ;;  %v624_v37 = vmul.f32 %v1250_v28, %v1483_v50  ;;  %v307_v39 = vrot.slane %v306_v27, 2  ;;  %v522_v44 = vadd.f32 %v521_v31, %v520_v8 }
  0xfa   :  { %v739_v40 = vsel %vm185_vm1, %v735_v29, 0.0  ;;  %v734_v42 = vmul.f32 %v1252_v34, %v1483_v50  ;;  %v196_v46 = vadd.f32 %v195_v38, %v194_v26  ;;  %v414_v51 = vadd.f32 %v413_v14, %v412_v43  ;;  %v1254_v61 = vpop.eup %1253 }
  0xfb   :  { %v628_v45 = vsel %vm185_vm1, %v624_v37, 0.0  ;;  %v308_v47 = vadd.f32 %v307_v39, %v306_v27  ;;  %v524_v54 = vadd.f32 %v523_v25, %v522_v44  ;;  %v937_v52 = vadd.f32 %v1518_v53, %v1465_v23  ;;  %v1256_v1 = vpop.eup %1255 }
  0xfc   :  { %v630_v35 = vadd.f32 %v629_v36, %v628_v45  ;;  %v738_v49 = vsel %vm185_vm1, %v734_v42, 0.0  ;;  %v197_v57 = vrot.slane %v196_v46, 1  ;;  %v415_v62 = vrot.slane %v414_v51, 4  ;;  %v1258_v4 = vpop.eup %1257 }
  0xfd   :  { %v1554_v55 = vadd.f32 %v739_v40, %v738_v49  ;;  %v309_v58 = vrot.slane %v308_v47, 1  ;;  %v525_v63 = vrot.slane %v524_v54, 4  ;;  %1261 = vtanh.f32 %v827_v48 }
  0xfe   :  { %v198_v2 = vadd.f32 %v197_v57, %v196_v46  ;;  %v416_v5 = vadd.f32 %v415_v62, %v414_v51  ;;  %1263 = vtanh.f32 %v937_v52  ;;  %v822_v7 = vadd.f32 %v1524_v59, %v1461_v21 }
  0xff   :  { %v310_v3 = vadd.f32 %v309_v58, %v308_v47  ;;  %v526_v6 = vadd.f32 %v525_v63, %v524_v54  ;;  %v627_v10 = vmul.f32 %v1254_v61, %v1491_v0  ;;  %v626_v23 = vmul.f32 %v1258_v4, %v1501_v16 }
 0x100   :  { %v200_v8 = vadd.f32 %v1559_v56, %v198_v2  ;;  %v417_v53 = vrot.slane %v416_v5, 2  ;;  %1265 = vtanh.f32 %v822_v7  ;;  %v932_v14 = vadd.f32 %v1526_v60, %v1461_v21 }
 0x101   :  { %v311_v9 = vadd.f32 %v310_v3, %v1559_v56  ;;  %v527_v13 = vrot.slane %v526_v6, 2  ;;  %v631_v59 = vsel %vm185_vm1, %v626_v23, 0.0  ;;  %v837_v15 = vadd.f32 %v1532_v11, %v1471_v32  ;;  %v1260_v11 = vpop.eup %1259 }
 0x102   :  { %202 = vst.msk [vmem:[#allocation2] sm:$0x1] %vm201_vm2, %v200_v8  ;;  %v947_v17 = vadd.f32 %v1534_v12, %v1471_v32  ;;  %v832_v20 = vadd.f32 %v831_v18, %v1463_v22  ;;  %v418_v24 = vadd.f32 %v417_v53, %v416_v5  ;;  %v632_v26 = vadd.f32 %v631_v59, %v630_v35 }
 0x103   :  { %312 = vst.msk [vmem:[#allocation2 + $0x1] sm:$0x1] %vm201_vm2, %v311_v9  ;;  %v528_v25 = vadd.f32 %v527_v13, %v526_v6  ;;  %1267 = vtanh.f32 %v932_v14  ;;  %v633_v21 = vsel %vm185_vm1, %v627_v10, 0.0  ;;  %v942_v60 = vadd.f32 %v1539_v19, %v1463_v22 }
 0x104   :  { %1269 = vtanh.f32 %v837_v15  ;;  %v419_v27 = vrot.slane %v418_v24, 1  ;;  %v634_v29 = vadd.f32 %v633_v21, %v632_v26  ;;  %v737_v31 = vmul.f32 %v1256_v1, %v1491_v0 }
 0x105   :  { %v529_v28 = vrot.slane %v528_v25, 1  ;;  %1271 = vtanh.f32 %v947_v17  ;;  %v736_v33 = vmul.f32 %v1260_v11, %v1501_v16 }
 0x106   :  { %1273 = vtanh.f32 %v832_v20  ;;  %v420_v30 = vadd.f32 %v419_v27, %v418_v24  ;;  %v635_v12 = vrot.slane %v634_v29, 4  ;;  %v743_v44 = vsel %vm185_vm1, %v737_v31, 0.0 }
 0x107   :  { %v530_v32 = vadd.f32 %v529_v28, %v528_v25  ;;  %1275 = vtanh.f32 %v942_v60  ;;  %v1262_v18 = vpop.eup %1261  ;;  %v741_v38 = vsel %vm185_vm1, %v736_v33, 0.0 }
 0x108   :  { %v1264_v34 = vpop.eup %1263  ;;  %v421_v36 = vadd.f32 %v420_v30, %v1559_v56  ;;  %v636_v19 = vadd.f32 %v635_v12, %v634_v29  ;;  %v845_v37 = vmul.f32 %v1262_v18, %v1477_v41  ;;  %v742_v43 = vadd.f32 %v741_v38, %v1554_v55 }
 0x109   :  { %v531_v22 = vadd.f32 %v530_v32, %v1559_v56  ;;  %v955_v39 = vmul.f32 %v1264_v34, %v1477_v41 }
 0x10a   :  { %v1266_v40 = vpop.eup %1265  ;;  %422 = vst.msk [vmem:[#allocation2 + $0x2] sm:$0x1] %vm201_vm2, %v421_v36  ;;  %v637_v42 = vrot.slane %v636_v19, 2  ;;  %v849_v45 = vsel %vm185_vm1, %v845_v37, 0.0  ;;  %v744_v35 = vadd.f32 %v743_v44, %v742_v43  ;;  %v982_v43 = vlaneseq }
 0x10b   :  { %532 = vst.msk [vmem:[#allocation2 + $0x3] sm:$0x1] %vm201_vm2, %v531_v22  ;;  %v844_v46 = vmul.f32 %v1266_v40, %v1483_v50  ;;  %v959_v41 = vsel %vm185_vm1, %v955_v39, 0.0 }
 0x10c   :  { %v638_v48 = vadd.f32 %v637_v42, %v636_v19  ;;  %v745_v61 = vrot.slane %v744_v35, 4  ;;  %v980_v19 = vld [vmem:[%s1649_s1] sm:$0xff]  ;;  %v983_v44 = vand.u32 127, %v982_v43  ;;  %s1310_s1 = smov 114  }
 0x10d   :  { %v1268_v47 = vpop.eup %1267  ;;  %v848_v51 = vsel %vm185_vm1, %v844_v46, 0.0 }
 0x10e   :  { %v1270_v49 = vpop.eup %1269  ;;  %v954_v54 = vmul.f32 %v1268_v47, %v1483_v50  ;;  %v639_v58 = vrot.slane %v638_v48, 1  ;;  %v850_v55 = vadd.f32 %v849_v45, %v848_v51  ;;  %v746_v2 = vadd.f32 %v745_v61, %v744_v35 }
 0x10f   :  { %v1272_v57 = vpop.eup %1271  ;;  %v847_v4 = vmul.f32 %v1270_v49, %v1491_v0  ;;  %vm991_vm4 = vcmp.ge.s32.totalorder %v983_v44, 1  ;;  %vm1004_vm5 = vcmp.ge.s32.totalorder %v983_v44, 2  ;;  %vm1017_vm6 = vcmp.ge.s32.totalorder %v983_v44, 4 }
 0x110   :  { %v1274_v62 = vpop.eup %1273  ;;  %v958_v63 = vsel %vm185_vm1, %v954_v54, 0.0  ;;  %v640_v1 = vadd.f32 %v639_v58, %v638_v48  ;;  %v957_v5 = vmul.f32 %v1272_v57, %v1491_v0  ;;  %v747_v8 = vrot.slane %v746_v2, 2 }
 0x111   :  { %v1276_v52 = vpop.eup %1275  ;;  %v960_v3 = vadd.f32 %v959_v41, %v958_v63  ;;  %v846_v6 = vmul.f32 %v1274_v62, %v1501_v16  ;;  %v853_v14 = vsel %vm185_vm1, %v847_v4, 0.0  ;;  %vm1030_vm7 = vcmp.ge.s32.totalorder %v983_v44, 8 }
 0x112   :  { %v956_v7 = vmul.f32 %v1276_v52, %v1501_v16  ;;  %v641_v50 = vadd.f32 %v640_v1, %v1559_v56  ;;  %v748_v23 = vadd.f32 %v747_v8, %v746_v2  ;;  %v963_v0 = vsel %vm185_vm1, %v957_v5, 0.0 }
 0x113   :  { %v851_v9 = vsel %vm185_vm1, %v846_v6, 0.0 }
 0x114   :  { %v961_v10 = vsel %vm185_vm1, %v956_v7, 0.0  ;;  %642 = vst.msk [vmem:[#allocation2 + $0x4] sm:$0x1] %vm201_vm2, %v641_v50  ;;  %v852_v53 = vadd.f32 %v851_v9, %v850_v55  ;;  %v749_v59 = vrot.slane %v748_v23, 1 }
 0x115   :  { %v962_v13 = vadd.f32 %v961_v10, %v960_v3 }
 0x116   :  { %v854_v15 = vadd.f32 %v853_v14, %v852_v53  ;;  %v750_v16 = vadd.f32 %v749_v59, %v748_v23 }
 0x117   :  { %v964_v17 = vadd.f32 %v963_v0, %v962_v13 }
 0x118   :  { %v855_v20 = vrot.slane %v854_v15, 4  ;;  %v751_v25 = vadd.f32 %v750_v16, %v1559_v56 }
 0x119   :  { %v965_v24 = vrot.slane %v964_v17, 4 }
 0x11a   :  { %v856_v26 = vadd.f32 %v855_v20, %v854_v15  ;;  %752 = vst.msk [vmem:[#allocation2 + $0x5] sm:$0x1] %vm201_vm2, %v751_v25 }
 0x11b   :  { %v966_v21 = vadd.f32 %v965_v24, %v964_v17 }
 0x11c   :  { %v857_v60 = vrot.slane %v856_v26, 2 }
 0x11d   :  { %v967_v27 = vrot.slane %v966_v21, 2 }
 0x11e   :  { %v858_v28 = vadd.f32 %v857_v60, %v856_v26 }
 0x11f   :  { %v968_v29 = vadd.f32 %v967_v27, %v966_v21 }
 0x120   :  { %v859_v11 = vrot.slane %v858_v28, 1 }
 0x121   :  { %v969_v30 = vrot.slane %v968_v29, 1 }
 0x122   :  { %v860_v32 = vadd.f32 %v859_v11, %v858_v28 }
 0x123   :  { %v970_v12 = vadd.f32 %v969_v30, %v968_v29 }
 0x124   :  { %v861_v18 = vadd.f32 %v860_v32, %v1559_v56 }
 0x125   :  { %v971_v31 = vadd.f32 %v970_v12, %v1559_v56 }
 0x126   :  { %862 = vst.msk [vmem:[#allocation2 + $0x6] sm:$0x1] %vm201_vm2, %v861_v18 }
 0x127   :  { %972 = vst.msk [vmem:[#allocation2 + $0x7] sm:$0x1] %vm201_vm2, %v971_v31 }
 0x12e   :  { %v973_v33 = vld [vmem:[#allocation2] sm:$0xff] }
 0x12f   :  { %v1099_v34 = vmul.f32 -1.442695, %v973_v33 }
 0x131   :  { %1277 = vpow2.f32 %v1099_v34 }
 0x13b   :  { %v1278_v36 = vpop.eup %1277 }
 0x13c   :  { %v977_v22 = vadd.f32 1.0, %v1278_v36 }
 0x13e   :  { %1279 = vrcp.f32 %v977_v22 }
 0x148   :  { %v1280_v37 = vpop.eup %1279 }
 0x149   :  { %v981_v38 = vmul.f32 %v1280_v37, %v980_v19 }
 0x14b   :  { %985 = vrot.lane.b32.xlu0 %v981_v38, %s1308_s12 }
 0x1bd   :  { %v986_v56 = vpop.permute.xlu0 %985 }
 0x1be   :  { %v987_v39 = vsel %vm984_vm3, %v986_v56, %v981_v38 }
 0x1bf   :  { %988 = vrot.lane.b32.xlu1 %v987_v39, %s1308_s12 }
 0x231   :  { %v989_v40 = vpop.permute.xlu1 %988 }
 0x232   :  { %v990_v42 = vsel %vm984_vm3, %v989_v40, %v981_v38 }
 0x233   :  { %993 = vrot.lane.b32.xlu0 %v990_v42, %s1309_s13 }
 0x2a5   :  { %v994_v45 = vpop.permute.xlu0 %993 }
 0x2a6   :  { %v996_v46 = vsel %vm991_vm4, %v994_v45, 0.0 }
 0x2a7   :  { %v997_v47 = vadd.f32 %v996_v46, %v981_v38 }
 0x2a9   :  { %998 = vrot.lane.b32.xlu1 %v997_v47, %s1308_s12 }
 0x31b   :  { %v999_v48 = vpop.permute.xlu1 %998 }
 0x31c   :  { %v1000_v35 = vsel %vm984_vm3, %v999_v48, %v997_v47 }
 0x31d   :  { %1001 = vrot.lane.b32.xlu0 %v1000_v35, %s1308_s12 }
 0x38f   :  { %v1002_v49 = vpop.permute.xlu0 %1001 }
 0x390   :  { %v1003_v41 = vsel %vm984_vm3, %v1002_v49, %v997_v47 }
 0x391   :  { %1006 = vrot.lane.b32.xlu1 %v1003_v41, %s1310_s1 }
 0x403   :  { %v1007_v51 = vpop.permute.xlu1 %1006 }
 0x404   :  { %v1009_v54 = vsel %vm1004_vm5, %v1007_v51, 0.0 }
 0x405   :  { %v1010_v57 = vadd.f32 %v1009_v54, %v997_v47 }
 0x407   :  { %1011 = vrot.lane.b32.xlu0 %v1010_v57, %s1308_s12 }
 0x479   :  { %v1012_v58 = vpop.permute.xlu0 %1011 }
 0x47a   :  { %v1013_v61 = vsel %vm984_vm3, %v1012_v58, %v1010_v57 }
 0x47b   :  { %1014 = vrot.lane.b32.xlu1 %v1013_v61, %s1308_s12 }
 0x4ed   :  { %v1015_v55 = vpop.permute.xlu1 %1014 }
 0x4ee   :  { %v1016_v62 = vsel %vm984_vm3, %v1015_v55, %v1010_v57 }
 0x4ef   :  { %1019 = vrot.lane.b32.xlu0 %v1016_v62, %s1311_s14 }
 0x561   :  { %v1020_v63 = vpop.permute.xlu0 %1019 }
 0x562   :  { %v1022_v52 = vsel %vm1017_vm6, %v1020_v63, 0.0 }
 0x563   :  { %v1023_v1 = vadd.f32 %v1022_v52, %v1010_v57 }
 0x565   :  { %1024 = vrot.lane.b32.xlu1 %v1023_v1, %s1308_s12 }
 0x5d7   :  { %v1025_v2 = vpop.permute.xlu1 %1024 }
 0x5d8   :  { %v1026_v3 = vsel %vm984_vm3, %v1025_v2, %v1023_v1 }
 0x5d9   :  { %1027 = vrot.lane.b32.xlu0 %v1026_v3, %s1308_s12 }
 0x64b   :  { %v1028_v4 = vpop.permute.xlu0 %1027 }
 0x64c   :  { %v1029_v5 = vsel %vm984_vm3, %v1028_v4, %v1023_v1 }
 0x64d   :  { %1032 = vrot.lane.b32.xlu1 %v1029_v5, %s1312_s15 }
 0x6bf   :  { %v1033_v6 = vpop.permute.xlu1 %1032 }
 0x6c0   :  { %v1035_v7 = vsel %vm1030_vm7, %v1033_v6, 0.0 }
 0x6c1   :  { %v1036_v50 = vadd.f32 %v1035_v7, %v1023_v1 }
 0x6c3   :  { %v1037_v8 = vmul.f32 %v1036_v50, %v980_v19 }
 0x6c5   :  { %v1038_v9 = vsel %vm185_vm1, %v1037_v8, -inf }
 0x6c6   :  { %1039 = vmax.xlane.f32.xlu0 %v1038_v9 }
 0x753   :  { %v1040_v10 = vpop.xlane.xlu0 %1039 }
 0x754   :  { %vm1041_vm8 = vcmp.eq.f32.partialorder %v1040_v10, 0.0 }
 0x755   :  { %v1042_v23 = vsel %vm1041_vm8, 1.0, %v1040_v10 }
 0x756   :  { %1281 = vrcp.f32 %v1042_v23 }
 0x760   :  { %v1282_v53 = vpop.eup %1281 }
 0x761   :  { %v1044_v13 = vmul.f32 %v1282_v53, %v1037_v8 }
 0x763   :  { %1045 = vst.msk [vmem:[#allocation4] sm:$0xff] %vm185_vm1, %v1044_v13 }
 0x764   :  { %1294 = shalt.err (!%p1291_p4)
}
 0x765   :  { %s1295_s20 = scalar_lea.hbm %s1654_s6, 128 }
 0x766   :  { %p1296_p5 = scmp.ne.s32.totalorder %s1654_s6, %s1295_s20  ;;  %p1299_p6 = scmp.lt.u32.totalorder %s1295_s20, %s1654_s6 }
 0x768   :  { %p1301_p7 = pnand %p1299_p6, %p1296_p5 }
 0x76a   :  { %1304 = shalt.err (!%p1301_p7)
}
 0x76b   :  { %1055 = dma.vmem_to_hbm [thread:$0]  %s1053_s2, 128, %s1654_s6, [#allocation5]  }
 0x76c   :  { %1305 = dma.done.wait [#allocation5], 128  }
 0x76d   :  { %1306 = vsyncadd [#allocation5], 4294967168 }
 0x76e   :  { %1059 = vsyncpa [#allocation5], 1 }

</bundles_post_ra>
